<compile_context>
chip_gen: v6e
topology: v6e:2x2x1
jax: 0.10.0
libtpu: 0.0.40
codegen_flags: <defaults>
</compile_context>

<pallas_src>
import jax
import jax.numpy as jnp
from jax.experimental import pallas as pl
from jax.experimental.pallas import tpu as pltpu


def _round_up(x, m):
    return ((x + m - 1) // m) * m


def _mlp_kernel(x_ref, w1_ref, b1_ref, w2_ref, b2_ref, out_ref):
    # x / w1 / w2 are bf16 (MXU-native); accumulate in f32, epilogue in f32.
    x = x_ref[...]
    h = jnp.dot(x, w1_ref[...], preferred_element_type=jnp.float32)
    h = jnp.maximum(h + b1_ref[...], 0.0)
    o = jnp.dot(h.astype(jnp.bfloat16), w2_ref[...],
                preferred_element_type=jnp.float32)
    out_ref[...] = jnp.maximum(o + b2_ref[...], 0.0)


def jss_feature_extractor(obs_dict, params, *, block_b=128):
    """Pallas implementation of JSSFeatureExtractor.forward.

    obs_dict: {'real_obs': (B, jobs, feat) or (jobs, feat), 'action_mask': ...}
    params:   {'w1': (D_in, 2H), 'b1': (1, 2H), 'w2': (2H, H), 'b2': (1, H)}
    Returns (features, action_mask) exactly like the torch module.
    """
    real_obs = obs_dict["real_obs"]
    action_mask = obs_dict["action_mask"]

    if real_obs.ndim == 2:
        flat_obs = real_obs.reshape(1, -1)
    else:
        flat_obs = real_obs.reshape(real_obs.shape[0], -1)

    w1, b1, w2, b2 = params["w1"], params["b1"], params["w2"], params["b2"]
    B, D_in = flat_obs.shape
    H2 = w1.shape[1]
    H = w2.shape[1]

    # bf16 operands for the MXU (halves input DMA bytes; f32->bf16 cast only).
    x_bf = flat_obs.astype(jnp.bfloat16)
    w1_bf = w1.astype(jnp.bfloat16)
    w2_bf = w2.astype(jnp.bfloat16)

    # Lane-dense output: pad output features to a multiple of 128 -> unmasked vst.
    H_pad = _round_up(H, 128)
    b2_p = b2
    if H_pad != H:
        w2_bf = jnp.pad(w2_bf, ((0, 0), (0, H_pad - H)))
        b2_p = jnp.pad(b2, ((0, 0), (0, H_pad - H)))

    # Batch tiling: TB rows per grid step (sublane aligned); pad B to a multiple.
    TB = min(block_b, _round_up(B, 8))
    B_pad = _round_up(B, TB)
    if B_pad != B:
        x_bf = jnp.pad(x_bf, ((0, B_pad - B), (0, 0)))

    grid = (B_pad // TB,)

    out_padded = pl.pallas_call(
        _mlp_kernel,
        out_shape=jax.ShapeDtypeStruct((B_pad, H_pad), jnp.float32),
        grid_spec=pltpu.PrefetchScalarGridSpec(
            num_scalar_prefetch=0,
            grid=grid,
            in_specs=[
                pl.BlockSpec((TB, D_in), lambda i: (i, 0)),   # activations: tiled
                pl.BlockSpec((D_in, H2), lambda i: (0, 0)),   # w1: resident
                pl.BlockSpec((1, H2), lambda i: (0, 0)),      # b1: resident
                pl.BlockSpec((H2, H_pad), lambda i: (0, 0)),  # w2 (lane-padded)
                pl.BlockSpec((1, H_pad), lambda i: (0, 0)),   # b2 (lane-padded)
            ],
            out_specs=pl.BlockSpec((TB, H_pad), lambda i: (i, 0)),
        ),
        compiler_params=pltpu.CompilerParams(
            dimension_semantics=("parallel",),
        ),
    )(x_bf, w1_bf, b1, w2_bf, b2_p)

    features = out_padded[:B, :H]
    return features, action_mask


def init_params(key, input_dim, hidden_dim):
    """Deterministic synthetic init (shapes match the nn.Linear layers)."""
    k1, k2, k3, k4 = jax.random.split(key, 4)
    h2 = hidden_dim * 2
    s1 = 1.0 / jnp.sqrt(input_dim)
    s2 = 1.0 / jnp.sqrt(h2)
    return {
        "w1": jax.random.uniform(k1, (input_dim, h2), jnp.float32, -s1, s1),
        "b1": jax.random.uniform(k2, (1, h2), jnp.float32, -s1, s1),
        "w2": jax.random.uniform(k3, (h2, hidden_dim), jnp.float32, -s2, s2),
        "b2": jax.random.uniform(k4, (1, hidden_dim), jnp.float32, -s2, s2),
    }


if __name__ == "__main__":
    key = jax.random.PRNGKey(0)
    k_obs, k_mask, k_params = jax.random.split(key, 3)

    # JSSEnv-like shapes; vectorized-env batch so the grid actually tiles (2 steps).
    batch = 256
    jobs = 8
    features_per_job = 7
    hidden_dim = 64          # module default
    input_dim = jobs * features_per_job
    action_mask_dim = jobs + 1

    real_obs = jax.random.uniform(
        k_obs, (batch, jobs, features_per_job), jnp.float32
    )
    action_mask = (
        jax.random.uniform(k_mask, (batch, action_mask_dim)) > 0.5
    ).astype(jnp.float32)

    params = init_params(k_params, input_dim, hidden_dim)

    obs_dict = {"real_obs": real_obs, "action_mask": action_mask}
    features, mask_out = jss_feature_extractor(obs_dict, params)
    jax.block_until_ready(features)
    jax.block_until_ready(mask_out)

    flat = real_obs.reshape(batch, -1)

    # Reference 1: same bf16-MXU math in plain JAX (tight check of kernel plumbing).
    x_bf = flat.astype(jnp.bfloat16)
    w1_bf = params["w1"].astype(jnp.bfloat16)
    w2_bf = params["w2"].astype(jnp.bfloat16)
    h_ref = jnp.maximum(
        jnp.dot(x_bf, w1_bf, preferred_element_type=jnp.float32) + params["b1"], 0.0
    )
    ref_bf16 = jnp.maximum(
        jnp.dot(h_ref.astype(jnp.bfloat16), w2_bf,
                preferred_element_type=jnp.float32) + params["b2"], 0.0
    )

    # Reference 2: full f32 math (what the torch module computes), loose tolerance
    # because the kernel intentionally uses bf16 MXU inputs.
    ref_f32 = jnp.maximum(flat @ params["w1"] + params["b1"], 0.0)
    ref_f32 = jnp.maximum(ref_f32 @ params["w2"] + params["b2"], 0.0)

    assert features.shape == (batch, hidden_dim)
    assert jnp.allclose(features, ref_bf16, atol=1e-4, rtol=1e-4)
    assert jnp.allclose(features, ref_f32, atol=5e-2, rtol=5e-2)
    assert jnp.array_equal(mask_out, action_mask)

    print("KERNEL_OK")
</pallas_src>

<mosaic_0001>
module attributes {stable_mosaic.version = 11 : i64} {
  func.func @_mlp_kernel(%arg0: i32, %arg1: memref<128x56xbf16, #tpu.memory_space<vmem>>, %arg2: memref<56x128xbf16, #tpu.memory_space<vmem>>, %arg3: memref<1x128xf32, #tpu.memory_space<vmem>>, %arg4: memref<128x128xbf16, #tpu.memory_space<vmem>>, %arg5: memref<1x128xf32, #tpu.memory_space<vmem>>, %arg6: memref<128x128xf32, #tpu.memory_space<vmem>>) attributes {dimension_semantics = [#tpu.dimension_semantics<parallel>], iteration_bounds = array<i64: 2>, scalar_prefetch = 0 : i64, scratch_operands = 0 : i64, tpu.core_type = #tpu.core_type<tc>, window_params = [{transform_indices = @transform_0, window_bounds = array<i64: 128, 56>}, {pipeline_mode = #tpu.pipeline_mode<synchronous>, transform_indices = @transform_1, window_bounds = array<i64: 56, 128>}, {pipeline_mode = #tpu.pipeline_mode<synchronous>, transform_indices = @transform_2, window_bounds = array<i64: 1, 128>}, {pipeline_mode = #tpu.pipeline_mode<synchronous>, transform_indices = @transform_3, window_bounds = array<i64: 128, 128>}, {pipeline_mode = #tpu.pipeline_mode<synchronous>, transform_indices = @transform_4, window_bounds = array<i64: 1, 128>}, {transform_indices = @transform_5, window_bounds = array<i64: 128, 128>}]} {
    %c0 = arith.constant 0 : index
    %c0_0 = arith.constant 0 : index
    %0 = vector.load %arg1[%c0, %c0_0] : memref<128x56xbf16, #tpu.memory_space<vmem>>, vector<128x56xbf16>
    %c0_1 = arith.constant 0 : index
    %c0_2 = arith.constant 0 : index
    %1 = vector.load %arg2[%c0_1, %c0_2] : memref<56x128xbf16, #tpu.memory_space<vmem>>, vector<56x128xbf16>
    %cst = arith.constant dense<0.000000e+00> : vector<128x128xf32>
    %2 = tpu.matmul %0, %1, %cst {dimension_numbers = #tpu.dot_dimension_numbers<[1], [0], [0], [1], [0, 0, 1, 1], [], []>} : vector<128x56xbf16>, vector<56x128xbf16>, vector<128x128xf32> -> vector<128x128xf32>
    %c0_3 = arith.constant 0 : index
    %c0_4 = arith.constant 0 : index
    %3 = vector.load %arg3[%c0_3, %c0_4] : memref<1x128xf32, #tpu.memory_space<vmem>>, vector<1x128xf32>
    %4 = vector.broadcast %3 : vector<1x128xf32> to vector<128x128xf32>
    %5 = arith.addf %2, %4 : vector<128x128xf32>
    %cst_5 = arith.constant 0.000000e+00 : f32
    %6 = vector.broadcast %cst_5 : f32 to vector<128x128xf32>
    %7 = arith.maximumf %5, %6 : vector<128x128xf32>
    %8 = arith.truncf %7 : vector<128x128xf32> to vector<128x128xbf16>
    %c0_6 = arith.constant 0 : index
    %c0_7 = arith.constant 0 : index
    %9 = vector.load %arg4[%c0_6, %c0_7] : memref<128x128xbf16, #tpu.memory_space<vmem>>, vector<128x128xbf16>
    %cst_8 = arith.constant dense<0.000000e+00> : vector<128x128xf32>
    %10 = tpu.matmul %8, %9, %cst_8 {dimension_numbers = #tpu.dot_dimension_numbers<[1], [0], [0], [1], [0, 0, 1, 1], [], []>} : vector<128x128xbf16>, vector<128x128xbf16>, vector<128x128xf32> -> vector<128x128xf32>
    %c0_9 = arith.constant 0 : index
    %c0_10 = arith.constant 0 : index
    %11 = vector.load %arg5[%c0_9, %c0_10] : memref<1x128xf32, #tpu.memory_space<vmem>>, vector<1x128xf32>
    %12 = vector.broadcast %11 : vector<1x128xf32> to vector<128x128xf32>
    %13 = arith.addf %10, %12 : vector<128x128xf32>
    %cst_11 = arith.constant 0.000000e+00 : f32
    %14 = vector.broadcast %cst_11 : f32 to vector<128x128xf32>
    %15 = arith.maximumf %13, %14 : vector<128x128xf32>
    %c0_12 = arith.constant 0 : index
    %c0_13 = arith.constant 0 : index
    %16 = vector.load %arg6[%c0_12, %c0_13] : memref<128x128xf32, #tpu.memory_space<vmem>>, vector<128x128xf32>
    tpu.vector_store %arg6[%c0_12, %c0_13], %15 {strides = array<i32>} : memref<128x128xf32, #tpu.memory_space<vmem>>, vector<128x128xf32>,
    return
  }
  func.func @transform_0(%arg0: i32) -> (i32, i32) {
    %c0_i32 = arith.constant 0 : i32
    %c0_i32_0 = arith.constant 0 : i32
    return %arg0, %c0_i32 : i32, i32
  }
  func.func @transform_1(%arg0: i32) -> (i32, i32) {
    %c0_i32 = arith.constant 0 : i32
    %c0_i32_0 = arith.constant 0 : i32
    %c0_i32_1 = arith.constant 0 : i32
    return %c0_i32, %c0_i32_0 : i32, i32
  }
  func.func @transform_2(%arg0: i32) -> (i32, i32) {
    %c0_i32 = arith.constant 0 : i32
    %c0_i32_0 = arith.constant 0 : i32
    %c0_i32_1 = arith.constant 0 : i32
    return %c0_i32, %c0_i32_0 : i32, i32
  }
  func.func @transform_3(%arg0: i32) -> (i32, i32) {
    %c0_i32 = arith.constant 0 : i32
    %c0_i32_0 = arith.constant 0 : i32
    %c0_i32_1 = arith.constant 0 : i32
    return %c0_i32, %c0_i32_0 : i32, i32
  }
  func.func @transform_4(%arg0: i32) -> (i32, i32) {
    %c0_i32 = arith.constant 0 : i32
    %c0_i32_0 = arith.constant 0 : i32
    %c0_i32_1 = arith.constant 0 : i32
    return %c0_i32, %c0_i32_0 : i32, i32
  }
  func.func @transform_5(%arg0: i32) -> (i32, i32) {
    %c0_i32 = arith.constant 0 : i32
    %c0_i32_0 = arith.constant 0 : i32
    return %arg0, %c0_i32 : i32, i32
  }
}

</mosaic_0001>

<bundles_post_ra>
// kernel: tpu_custom_call.1
= control target key start
LH: loop header
LB: loop body
LE: loop exit
PB: predicated region body
PF: predicated region fallthrough
CT: control target
= control target key end

     0   :  { %10 = vsyncpa [#allocation3], 0  ;;  %s1246_s0 = inlined_call_operand.vmem [shape: bf16[256,56], index: 0, kind: input, shape index: {}]   ;;  %s1247_s1 = inlined_call_operand.vmem [shape: bf16[56,128], index: 1, kind: input, shape index: {}]   ;;  %s1248_s2 = inlined_call_operand.vmem [shape: f32[1,128], index: 2, kind: input, shape index: {}]   ;;  %s1249_s3 = inlined_call_operand.vmem [shape: bf16[128,128], index: 3, kind: input, shape index: {}]   ;;  %s1250_s4 = inlined_call_operand.vmem [shape: f32[1,128], index: 4, kind: input, shape index: {}]   ;;  %s1251_s5 = inlined_call_operand.hbm [shape: f32[256,128], index: 5, kind: output, shape index: {}]  }
   0x1   :  { %12 = vsyncpa [#allocation3 + $0x1], 0  ;;  %s1044_s18 = smov 0   ;;  %s1046_s19 = smov 0  }
   0x2   :  { %s1048_s20 = smov 0   ;;  %s1050_s21 = smov 0  }
   0x3 LB: > { %s1065_s22 = sadd.s32 4294967295, %s1009_s21   ;;  %s744_s23 = sadd.s32 4294967294, %s1009_s21   ;;  %s1009_s21 = sphi %s1050_s21, %s1257_s21   ;;  %s1005_s20 = sphi %s1048_s20, %s1256_s20   ;;  %s1001_s19 = sphi %s1046_s19, %s1255_s19   ;;  %s997_s18 = sphi %s1044_s18, %s1254_s18  }
   0x4   : > { %s1069_s24 = sadd.s32 1, %s1009_s21   ;;  %s135_s25 = sadd.s32 1, %s1005_s20 }
   0x5   : > { %s132_s26 = ssub.s32 %s1009_s21, %s1069_s24  ;;  %p145_p0 = scmp.ne.s32.totalorder %s1005_s20, %s1001_s19 }
   0x6   : > { %p133_p1 = scmp.eq.s32.totalorder %s132_s26, 0  ;;  %p146_p2 = scmp.eq.s32.totalorder %s1065_s22, 1 }
   0x7   : > { %p151_p3 = scmp.ne.s32.totalorder %s1001_s19, %s997_s18  ;;  %p152_p4 = scmp.eq.s32.totalorder %s744_s23, 1 }
   0x8   : > { %s1080_s27 = scalar_select %p133_p1, %s1005_s20, %s135_s25  }
   0x9   : > { %p1082_p5 = por %p146_p2, %p145_p0  ;;  %p1086_p6 = por %p152_p4, %p151_p3 }
   0xa   : > { %p747_p7 = scmp.ge.s32.totalorder %s1009_s21, 1  ;;  %p191_p8 = scmp.lt.s32.totalorder %s1009_s21, 3 }
   0xc   : > { %p192_p9 = pnand %p747_p7, %p191_p8 }
   0xd   : > { %s749_s11 = sshll.u32 (!%p192_p9), %s1065_s22, 4  ;;  %s216_s26 = sand.u32 (!%p192_p9), 1, %s1001_s19  }
   0xe   : > { %195 = sbr.rel (%p192_p9) target bundleno = 483 (0x1e3), region = 40  ;;  %p220_p10 = scmp.lt.s32.totalorder (!%p192_p9), %s749_s11, 31 }
   0xf   : > { %s786_s9 = sshll.u32 (!%p192_p9), %s1065_s22, 11  ;;  %s1206_s22 = scalar_lea.sflag (!%p192_p9), [#allocation3], %s216_s26 }
  0x10   : > { %s1198_s13 = scalar_lea.hbm (!%p192_p9), %s1251_s5, %s786_s9  ;;  %s1011_s15 = smov (!%p192_p9), [#allocation2]  }
  0x11   : > { %s953_s16 = sshll.u32 (!%p192_p9), %s1011_s15, 4  ;;  %s954_s16 = int_to_ptr.vmem [resolvable:$false] %s953_s16 }
  0x12   : > { %s955_s17 = scalar_lea.vmem (!%p192_p9), %s954_s16, 4096 }
  0x13   : > { %v929_v0 = vld [vmem:[%s1247_s1 + $0x18] ss:$0 sps:$4 sm:$0xff]   ;;  %vm343_vm0 = vcmask 1043456   ;;  %v930_v1 = vld [vmem:[%s1247_s1 + $0x10] sm:$0xff]   ;;  %v931_v3 = vld [vmem:[%s1247_s1 + $0x8] sm:$0xff]   ;;  %s1259_s11 = smov (!%p220_p10, %s749_s11), 31 }
  0x14   : > { %887 = vmatprep.subr.msk.bf16.mxu0 %vm343_vm0, %v929_v0  ;;  %v345_v2 = vsel %vm343_vm0, %v929_v0, 0  ;;  %v941_v4 = vld [vmem:[%s1249_s3 + $0x38] sm:$0xff]   ;;  %v942_v5 = vld [vmem:[%s1249_s3 + $0x30] sm:$0xff]   ;;  %v932_v6 = vld [vmem:[%s1247_s1] sm:$0xff]   ;;  %vm318_vm1 = vcmask 457728   ;;  %s750_s23 = sshll.u32 %s1259_s11, 2 }
  0x15   : > { %816 = vmatpush3.bf16.msra.mxu0 %v345_v2  ;;  %871 = vmatprep.subr.bf16.mxu1 %v941_v4  ;;  %v943_v7 = vld [vmem:[%s1249_s3 + $0x28] sm:$0xff]   ;;  %s1117_s7 = scalar_lea.vmem %s1246_s0, %s750_s23  ;;  %v944_v9 = vld [vmem:[%s1249_s3 + $0x20] sm:$0xff]   ;;  %v945_v12 = vld [vmem:[%s1249_s3 + $0x18] sm:$0xff]  }
  0x16   : > { %817 = vmatprep.subr.bf16.mxu0 %v930_v1  ;;  %879 = vmatpush3.bf16.msra.mxu1 %v941_v4  ;;  %v933_v8 = vld [vmem:[%s1117_s7] sm:$0xff]   ;;  %v934_v10 = vld [vmem:[%s1117_s7 + $0x8] sm:$0xff]   ;;  %v935_v11 = vld [vmem:[%s1117_s7 + $0x10] sm:$0xff]  }
  0x17   : > { %872 = vmatprep.subr.bf16.mxu1 %v942_v5  ;;  %823 = vmatprep.mubr.msk.bf16.mxu0 %vm318_vm1, %v933_v8  ;;  %v936_v13 = vld [vmem:[%s1117_s7 + $0x18] sm:$0xff]   ;;  %v937_v14 = vld [vmem:[%s1117_s7 + $0x20] sm:$0xff]   ;;  %v938_v15 = vld [vmem:[%s1117_s7 + $0x28] sm:$0xff]  }
  0x18   : > { %v939_v16 = vld [vmem:[%s1117_s7 + $0x30] sm:$0xff]   ;;  %v940_v17 = vld [vmem:[%s1117_s7 + $0x38] sm:$0xff]   ;;  %v947_v19 = vld [vmem:[%s1249_s3 + $0x8] sm:$0xff]   ;;  %s748_s7 = sshll.u32 %s216_s26, 7 }
  0x19   : > { %818 = vmatpush3.bf16.msra.mxu0 %v930_v1  ;;  %v946_v18 = vld [vmem:[%s1249_s3 + $0x10] sm:$0xff]   ;;  %v948_v20 = vld [vmem:[%s1249_s3] sm:$0xff]   ;;  %s1163_s8 = scalar_lea.vmem [#allocation2], %s748_s7 }
  0x1a   : > { %819 = vmatprep.subr.bf16.mxu0 %v931_v3  ;;  %880 = vmatpush3.bf16.msra.mxu1 %v942_v5  ;;  %v751_v23 = vld [vmem:[%s1248_s2] ss:$0 sm:$0xff]  ;;  %s682_s10 = sshll.u32 %s1163_s8, 4  ;;  %s1200_s10 = int_to_ptr.vmem [resolvable:$true] %s682_s10 }
  0x1b   : > { %873 = vmatprep.subr.bf16.mxu1 %v943_v7  ;;  %s949_s14 = scalar_lea.vmem %s1200_s10, 2048  ;;  %p956_p0 = scmp.lt.s32.totalorder %s1200_s10, %s954_s16 }
  0x1c   : > { %p950_p11 = scmp.ne.s32.totalorder %s1200_s10, %s949_s14  ;;  %p957_p1 = scmp.lt.s32.totalorder %s955_s17, %s949_s14 }
  0x1d   : > { %820 = vmatpush3.bf16.msra.mxu0 %v931_v3 }
  0x1e   : > { %821 = vmatprep.subr.bf16.mxu0 %v932_v6  ;;  %881 = vmatpush3.bf16.msra.mxu1 %v943_v7  ;;  %p951_p12 = pnand %p950_p11, %p1082_p5  ;;  %p958_p2 = por %p957_p1, %p956_p0 }
  0x1f   : > { %874 = vmatprep.subr.bf16.mxu1 %v944_v9 }
  0x20   : > { %p952_p13 = pneg %p951_p12 }
  0x21   : > { %822 = vmatpush3.bf16.msra.mxu0 %v932_v6 }
  0x22   : > { %839 = vmatprep.subr.bf16.mxu0 %v941_v4  ;;  %882 = vmatpush3.bf16.msra.mxu1 %v944_v9  ;;  %p959_p3 = pnand %p958_p2, %p952_p13 }
  0x23   : > { %875 = vmatprep.subr.bf16.mxu1 %v945_v12 }
  0x24   : > { %824 = vmatmul.mubr.msk.bf16.vlgmr.msra.gmra.mxu0 %vm318_vm1, %v934_v10 }
  0x25   : > { %827 = vmatprep.mubr.msk.bf16.mxu0 %vm318_vm1, %v935_v11  ;;  %840 = vmatpush3.bf16.msra.mxu0 %v941_v4 }
  0x26   : > { %841 = vmatprep.subr.bf16.mxu0 %v942_v5  ;;  %883 = vmatpush3.bf16.msra.mxu1 %v945_v12 }
  0x27   : > { %876 = vmatprep.subr.bf16.mxu1 %v946_v18 }
  0x29   : > { %842 = vmatpush3.bf16.msra.mxu0 %v942_v5 }
  0x2a   : > { %843 = vmatprep.subr.bf16.mxu0 %v943_v7  ;;  %884 = vmatpush3.bf16.msra.mxu1 %v946_v18 }
  0x2b   : > { %877 = vmatprep.subr.bf16.mxu1 %v947_v19 }
  0x2c   : > { %828 = vmatmul.mubr.msk.bf16.gmra.mxu0 %vm318_vm1, %v936_v13 }
  0x2d   : > { %831 = vmatprep.mubr.msk.bf16.mxu0 %vm318_vm1, %v937_v14  ;;  %844 = vmatpush3.bf16.msra.mxu0 %v943_v7  ;;  %v1157_v14 = vld [vmem:[%s1250_s4] ss:$0 sm:$0xff] }
  0x2e   : > { %845 = vmatprep.subr.bf16.mxu0 %v944_v9  ;;  %885 = vmatpush3.bf16.msra.mxu1 %v947_v19 }
  0x2f   : > { %878 = vmatprep.subr.bf16.mxu1 %v948_v20 }
  0x31   : > { %846 = vmatpush3.bf16.msra.mxu0 %v944_v9 }
  0x32   : > { %847 = vmatprep.subr.bf16.mxu0 %v945_v12  ;;  %886 = vmatpush3.bf16.msra.mxu1 %v948_v20 }
  0x34   : > { %832 = vmatmul.mubr.msk.bf16.gmra.mxu0 %vm318_vm1, %v938_v15 }
  0x35   : > { %835 = vmatprep.mubr.msk.bf16.mxu0 %vm318_vm1, %v939_v16  ;;  %848 = vmatpush3.bf16.msra.mxu0 %v945_v12 }
  0x36   : > { %849 = vmatprep.subr.bf16.mxu0 %v946_v18 }
  0x39   : > { %850 = vmatpush3.bf16.msra.mxu0 %v946_v18 }
  0x3a   : > { %851 = vmatprep.subr.bf16.mxu0 %v947_v19 }
  0x3c   : > { %836 = vmatmul.mubr.msk.bf16.gmra.mxu0 %vm318_vm1, %v940_v17 }
  0x3d   : > { %852 = vmatpush3.bf16.msra.mxu0 %v947_v19 }
  0x3e   : > { %853 = vmatprep.subr.bf16.mxu0 %v948_v20 }
  0x41   : > { %854 = vmatpush3.bf16.msra.mxu0 %v948_v20 }
  0xe4   : > { %v825_v21 = vpop.f32.mrf.mxu0 }
  0xe5   : > { %v390_v27 = vadd.f32 %v825_v21, %v751_v23 }
  0xe6   : > { %v381_v22 = vpop.f32.mrf.mxu0 }
  0xe7   : > { %v382_v25 = vadd.f32 %v751_v23, %v381_v22  ;;  %v446_v34 = vmax.f32 %v390_v27, 0.0 }
  0xe8   : > { %v826_v24 = vpop.f32.mrf.mxu0 }
  0xe9   : > { %v393_v26 = vadd.f32 %v826_v24, %v751_v23  ;;  %v444_v32 = vmax.f32 %v382_v25, 0.0 }
  0xea   : > { %v384_v28 = vpop.f32.mrf.mxu0 }
  0xeb   : > { %v385_v29 = vadd.f32 %v751_v23, %v384_v28  ;;  %v447_v30 = vmax.f32 %v393_v26, 0.0 }
  0xec   : > { %v829_v31 = vpop.f32.mrf.mxu0 }
  0xed   : > { %v445_v33 = vmax.f32 %v385_v29, 0.0  ;;  %v461_v37 = vpack.c.bf16 %v447_v30, %v446_v34  ;;  %v406_v41 = vadd.f32 %v829_v31, %v751_v23 }
  0xee   : > { %v397_v35 = vpop.f32.mrf.mxu0 }
  0xef   : > { %v460_v36 = vpack.c.bf16 %v445_v33, %v444_v32  ;;  %v398_v39 = vadd.f32 %v751_v23, %v397_v35  ;;  %v450_v48 = vmax.f32 %v406_v41, 0.0 }
  0xf0   : > { %v830_v38 = vpop.f32.mrf.mxu0 }
  0xf1   : > { %v409_v40 = vadd.f32 %v830_v38, %v751_v23  ;;  %855 = vmatprep.mubr.bf16.mxu0 %v460_v36  ;;  %v448_v46 = vmax.f32 %v398_v39, 0.0 }
  0xf2   : > { %v400_v42 = vpop.f32.mrf.mxu0  ;;  %856 = vmatmul.mubr.bf16.vlgmr.msra.gmra.mxu0 %v461_v37 }
  0xf3   : > { %v401_v43 = vadd.f32 %v751_v23, %v400_v42  ;;  %v451_v44 = vmax.f32 %v409_v40, 0.0 }
  0xf4   : > { %v833_v45 = vpop.f32.mrf.mxu0 }
  0xf5   : > { %v449_v47 = vmax.f32 %v401_v43, 0.0  ;;  %v463_v51 = vpack.c.bf16 %v451_v44, %v450_v48  ;;  %v422_v55 = vadd.f32 %v833_v45, %v751_v23 }
  0xf6   : > { %v413_v49 = vpop.f32.mrf.mxu0 }
  0xf7   : > { %v462_v50 = vpack.c.bf16 %v449_v47, %v448_v46  ;;  %v414_v53 = vadd.f32 %v751_v23, %v413_v49  ;;  %v454_v62 = vmax.f32 %v422_v55, 0.0 }
  0xf8   : > { %v834_v52 = vpop.f32.mrf.mxu0 }
  0xf9   : > { %v425_v54 = vadd.f32 %v834_v52, %v751_v23  ;;  %859 = vmatprep.mubr.bf16.mxu1 %v462_v50  ;;  %v452_v60 = vmax.f32 %v414_v53, 0.0 }
  0xfa   : > { %v416_v56 = vpop.f32.mrf.mxu0  ;;  %860 = vmatmul.mubr.bf16.vlgmr.msra.gmra.mxu1 %v463_v51 }
  0xfb   : > { %v417_v57 = vadd.f32 %v751_v23, %v416_v56  ;;  %v455_v58 = vmax.f32 %v425_v54, 0.0 }
  0xfc   : > { %v837_v59 = vpop.f32.mrf.mxu0 }
  0xfd   : > { %v453_v61 = vmax.f32 %v417_v57, 0.0  ;;  %v465_v1 = vpack.c.bf16 %v455_v58, %v454_v62  ;;  %v438_v5 = vadd.f32 %v837_v59, %v751_v23 }
  0xfe   : > { %v429_v63 = vpop.f32.mrf.mxu0 }
  0xff   : > { %v464_v0 = vpack.c.bf16 %v453_v61, %v452_v60  ;;  %v430_v3 = vadd.f32 %v751_v23, %v429_v63  ;;  %v458_v11 = vmax.f32 %v438_v5, 0.0 }
 0x100   : > { %v838_v2 = vpop.f32.mrf.mxu0 }
 0x101   : > { %v441_v4 = vadd.f32 %v838_v2, %v751_v23  ;;  %863 = vmatprep.mubr.bf16.mxu1 %v464_v0  ;;  %v456_v9 = vmax.f32 %v430_v3, 0.0 }
 0x102   : > { %v432_v6 = vpop.f32.mrf.mxu0  ;;  %864 = vmatmul.mubr.bf16.gmra.mxu1 %v465_v1 }
 0x103   : > { %v433_v7 = vadd.f32 %v751_v23, %v432_v6  ;;  %v459_v8 = vmax.f32 %v441_v4, 0.0 }
 0x105   : > { %v457_v10 = vmax.f32 %v433_v7, 0.0  ;;  %v467_v13 = vpack.c.bf16 %v459_v8, %v458_v11 }
 0x107   : > { %v466_v12 = vpack.c.bf16 %v457_v10, %v456_v9 }
 0x109   : > { %867 = vmatprep.mubr.bf16.mxu1 %v466_v12 }
 0x10a   : > { %868 = vmatmul.mubr.bf16.gmra.mxu1 %v467_v13 }
 0x1b2   : > { %v857_v15 = vpop.f32.mrf.mxu0 }
 0x1b3   : > { %v582_v16 = vadd.f32 %v857_v15, %v1157_v14 }
 0x1b4   : > { %v573_v17 = vpop.f32.mrf.mxu0 }
 0x1b5   : > { %v638_v18 = vmax.f32 %v582_v16, 0.0  ;;  %v574_v19 = vadd.f32 %v1157_v14, %v573_v17 }
 0x1b6   : > { %v858_v20 = vpop.f32.mrf.mxu0 }
 0x1b7   : > { %654 = vst [vmem:[%s1163_s8 + $0x10] sm:$0xff] %v638_v18  ;;  %v636_v21 = vmax.f32 %v574_v19, 0.0  ;;  %v585_v22 = vadd.f32 %v858_v20, %v1157_v14 }
 0x1b8   : > { %v576_v23 = vpop.f32.mrf.mxu0 }
 0x1b9   : > { %652 = vst [vmem:[%s1163_s8] sm:$0xff] %v636_v21  ;;  %v639_v24 = vmax.f32 %v585_v22, 0.0  ;;  %v577_v25 = vadd.f32 %v1157_v14, %v576_v23 }
 0x1ba   : > { %v861_v26 = vpop.f32.mrf.mxu1 }
 0x1bb   : > { %655 = vst [vmem:[%s1163_s8 + $0x18] sm:$0xff] %v639_v24  ;;  %v637_v27 = vmax.f32 %v577_v25, 0.0  ;;  %v598_v28 = vadd.f32 %v861_v26, %v1157_v14 }
 0x1bc   : > { %v589_v29 = vpop.f32.mrf.mxu1 }
 0x1bd   : > { %653 = vst [vmem:[%s1163_s8 + $0x8] sm:$0xff] %v637_v27  ;;  %v642_v30 = vmax.f32 %v598_v28, 0.0  ;;  %v590_v31 = vadd.f32 %v1157_v14, %v589_v29 }
 0x1be   : > { %v862_v32 = vpop.f32.mrf.mxu1 }
 0x1bf   : > { %658 = vst [vmem:[%s1163_s8 + $0x30] sm:$0xff] %v642_v30  ;;  %v640_v33 = vmax.f32 %v590_v31, 0.0  ;;  %v601_v34 = vadd.f32 %v862_v32, %v1157_v14 }
 0x1c0   : > { %v592_v35 = vpop.f32.mrf.mxu1 }
 0x1c1   : > { %656 = vst [vmem:[%s1163_s8 + $0x20] sm:$0xff] %v640_v33  ;;  %v643_v36 = vmax.f32 %v601_v34, 0.0  ;;  %v593_v37 = vadd.f32 %v1157_v14, %v592_v35 }
 0x1c2   : > { %v865_v38 = vpop.f32.mrf.mxu1 }
 0x1c3   : > { %659 = vst [vmem:[%s1163_s8 + $0x38] sm:$0xff] %v643_v36  ;;  %v641_v39 = vmax.f32 %v593_v37, 0.0  ;;  %v614_v40 = vadd.f32 %v865_v38, %v1157_v14 }
 0x1c4   : > { %v605_v41 = vpop.f32.mrf.mxu1 }
 0x1c5   : > { %657 = vst [vmem:[%s1163_s8 + $0x28] sm:$0xff] %v641_v39  ;;  %v646_v42 = vmax.f32 %v614_v40, 0.0  ;;  %v606_v43 = vadd.f32 %v1157_v14, %v605_v41 }
 0x1c6   : > { %v866_v44 = vpop.f32.mrf.mxu1 }
 0x1c7   : > { %662 = vst [vmem:[%s1163_s8 + $0x50] sm:$0xff] %v646_v42  ;;  %v644_v45 = vmax.f32 %v606_v43, 0.0  ;;  %v617_v46 = vadd.f32 %v866_v44, %v1157_v14 }
 0x1c8   : > { %v608_v47 = vpop.f32.mrf.mxu1 }
 0x1c9   : > { %660 = vst [vmem:[%s1163_s8 + $0x40] sm:$0xff] %v644_v45  ;;  %v647_v48 = vmax.f32 %v617_v46, 0.0  ;;  %v609_v49 = vadd.f32 %v1157_v14, %v608_v47 }
 0x1ca   : > { %v869_v50 = vpop.f32.mrf.mxu1 }
 0x1cb   : > { %663 = vst [vmem:[%s1163_s8 + $0x58] sm:$0xff] %v647_v48  ;;  %v645_v51 = vmax.f32 %v609_v49, 0.0  ;;  %v630_v52 = vadd.f32 %v869_v50, %v1157_v14 }
 0x1cc   : > { %v621_v53 = vpop.f32.mrf.mxu1 }
 0x1cd   : > { %661 = vst [vmem:[%s1163_s8 + $0x48] sm:$0xff] %v645_v51  ;;  %v650_v54 = vmax.f32 %v630_v52, 0.0  ;;  %v622_v55 = vadd.f32 %v1157_v14, %v621_v53 }
 0x1ce   : > { %v870_v56 = vpop.f32.mrf.mxu1 }
 0x1cf   : > { %666 = vst [vmem:[%s1163_s8 + $0x70] sm:$0xff] %v650_v54  ;;  %v648_v57 = vmax.f32 %v622_v55, 0.0  ;;  %v633_v58 = vadd.f32 %v870_v56, %v1157_v14 }
 0x1d0   : > { %v624_v59 = vpop.f32.mrf.mxu1 }
 0x1d1   : > { %664 = vst [vmem:[%s1163_s8 + $0x60] sm:$0xff] %v648_v57  ;;  %v651_v60 = vmax.f32 %v633_v58, 0.0  ;;  %v625_v61 = vadd.f32 %v1157_v14, %v624_v59 }
 0x1d3   : > { %667 = vst [vmem:[%s1163_s8 + $0x78] sm:$0xff] %v651_v60  ;;  %v649_v62 = vmax.f32 %v625_v61, 0.0 }
 0x1d5   : > { %665 = vst [vmem:[%s1163_s8 + $0x68] sm:$0xff] %v649_v62 }
 0x1d6   : > { %962 = shalt.err (!%p959_p3)
}
 0x1d7   : > { %s963_s23 = scalar_lea.hbm %s1198_s13, 2048  ;;  %s967_s30 = scalar_lea.hbm %s1251_s5, 4096 }
 0x1d8   : > { %p964_p4 = scmp.ne.s32.totalorder %s1198_s13, %s963_s23  ;;  %p968_p9 = scmp.lt.s32.totalorder %s1198_s13, %s1251_s5 }
 0x1d9   : > { %p969_p10 = scmp.lt.s32.totalorder %s967_s30, %s963_s23 }
 0x1da   : > { %p965_p7 = pnand %p964_p4, %p1082_p5 }
 0x1db   : > { %p970_p11 = por %p969_p10, %p968_p9 }
 0x1dc   : > { %p966_p8 = pneg %p965_p7 }
 0x1de   : > { %p971_p12 = pnand %p970_p11, %p966_p8 }
 0x1e0   : > { %974 = shalt.err (!%p971_p12)
}
 0x1e1   : > { %s1012_s8 = smov 128   ;;  %s1013_s9 = smov 8  }
 0x1e2   : > { %888 = dma.vmem_to_hbm [thread:$0]  (%p1082_p5), %s1200_s10, 2048, %s1198_s13, %s1206_s22, %s1012_s8, %s1012_s8, %s1013_s9  }
 0x1e3 PF: > { %p894_p13 = scmp.ge.s32.totalorder %s1009_s21, 2  ;;  %s697_s11 = sand.u32 1, %s997_s18  }
 0x1e4   : > { %s698_s12 = scalar_lea.sflag [#allocation3], %s697_s11 }
 0x1e5   : > { %p891_p0 = pnand %p894_p13, %p1086_p6 }
 0x1e7   : > { %p892_p1 = pneg %p891_p0 }
 0x1e9   : > { %992 = dma.done.wait (%p892_p1), %s698_s12, 2048  }
 0x1ea   : > { %994 = vsyncadd (%p892_p1), %s698_s12, 4294965248  ;;  %p15_p2 = scmp.ge.s32.totalorder %s1069_s24, 4   ;;  %s1254_s18 = smov %s1001_s19 }
 0x1eb   : > { %s1255_s19 = smov %s1005_s20  ;;  %s1256_s20 = smov %s1080_s27 }
 0x1ec   : > { %s1257_s21 = smov %s1069_s24  ;;  %17 = sbr.rel (!%p15_p2) target bundleno = 3 (0x3), region = 75 }
 0x1f1   :  { %703 = vsyncpa [#allocation3], 1 }
 0x1f2   :  { %705 = vsyncpa [#allocation3 + $0x1], 1 }

</bundles_post_ra>
